<compile_context>
chip_gen: v5e
topology: v5e:2x2
jax: 0.10.0
libtpu: 0.0.40
codegen_flags: <defaults>
</compile_context>

<pallas_src>
import functools

import jax
import jax.numpy as jnp
from jax.experimental import pallas as pl
from jax.experimental.pallas import tpu as pltpu


# ----------------------------------------------------------------------------
# Kernel
# ----------------------------------------------------------------------------
def _trimodal_kernel(t_ref, v_ref, a_ref,
                     wt_ref, wv_ref, wa_ref,
                     b_ref, o_ref, *, inv_st, inv_sv, inv_sa):
    """One batch tile per grid step.

    Each modality block (TB, S_m, D_m) is mean-pooled over the sequence axis in
    f32 (exact 1/S scale applied in f32), cast to the MXU operand dtype, and
    contracted against its small (D_m, N_pad) weight whose columns were
    pre-placed into disjoint lane ranges — so the three projections accumulate
    into one lane-dense f32 slab.  Bias add + ReLU happen once and the store is
    a single unmasked (TB, N_pad) vst.
    """
    op_dtype = wt_ref.dtype

    t_pool = (jnp.sum(t_ref[...].astype(jnp.float32), axis=1) * inv_st).astype(op_dtype)
    v_pool = (jnp.sum(v_ref[...].astype(jnp.float32), axis=1) * inv_sv).astype(op_dtype)
    a_pool = (jnp.sum(a_ref[...].astype(jnp.float32), axis=1) * inv_sa).astype(op_dtype)

    acc = jnp.dot(t_pool, wt_ref[...], preferred_element_type=jnp.float32)
    acc = acc + jnp.dot(v_pool, wv_ref[...], preferred_element_type=jnp.float32)
    acc = acc + jnp.dot(a_pool, wa_ref[...], preferred_element_type=jnp.float32)
    acc = acc + b_ref[...]                      # (1, N_pad) f32 broadcast
    o_ref[...] = jnp.maximum(acc, 0.0).astype(o_ref.dtype)


# ----------------------------------------------------------------------------
# One-time parameter packing (hoisted out of the per-call path)
# ----------------------------------------------------------------------------
def pack_trimodal_params(params, compute_dtype=jnp.bfloat16):
    """Column-place per-modality weights/biases into lane-dense slabs. Run once.

    Returns packed weights (D_m, N_pad) in `compute_dtype` and a single
    (1, N_pad) f32 bias, with N_pad = 3*E rounded up to 128.
    """
    e = params["wt"].shape[1]
    n_out = 3 * e
    n_pad = 128 * pl.cdiv(n_out, 128)

    def place(w, col):
        d, ee = w.shape
        slab = jnp.zeros((d, n_pad), jnp.float32)
        slab = slab.at[:, col:col + ee].set(w.astype(jnp.float32))
        return slab.astype(compute_dtype)

    bias = jnp.zeros((1, n_pad), jnp.float32)
    bias = bias.at[:, 0 * e:1 * e].set(params["bt"].reshape(1, e).astype(jnp.float32))
    bias = bias.at[:, 1 * e:2 * e].set(params["bv"].reshape(1, e).astype(jnp.float32))
    bias = bias.at[:, 2 * e:3 * e].set(params["ba"].reshape(1, e).astype(jnp.float32))

    return {
        "wt": place(params["wt"], 0 * e),
        "wv": place(params["wv"], 1 * e),
        "wa": place(params["wa"], 2 * e),
        "bias": bias,
        "n_out": n_out,
        "n_pad": n_pad,
    }


def _choose_tb(batch):
    """Batch tile: fat tiles amortize the ~0.35us/step overhead on v5e/v6e's
    single TC; for large batches keep >=2 grid steps so ("parallel",) can shard
    the grid across v7x's two TensorCores."""
    if batch <= 256:
        return batch
    if batch <= 1024:
        return 8 * pl.cdiv(pl.cdiv(batch, 2), 8)   # two sublane-aligned steps
    return 512


# ----------------------------------------------------------------------------
# Forward
# ----------------------------------------------------------------------------
def trimodal_emotion_embedding(text, video, audio, packed,
                               tb=None, strip_padding=True):
    """text/video/audio: (B, S_m, D_m).  `packed` from pack_trimodal_params().

    Returns (B, 3*E) float32 (or the padded (B, N_pad) slab when
    strip_padding=False, which avoids an extra HBM read+write of the output).
    """
    B, S_T, D_T = text.shape
    _, S_V, D_V = video.shape
    _, S_A, D_A = audio.shape
    assert video.shape[0] == B and audio.shape[0] == B

    compute_dtype = packed["wt"].dtype
    n_pad = packed["n_pad"]
    n_out = packed["n_out"]

    def cast(x):
        return x if x.dtype == compute_dtype else x.astype(compute_dtype)

    t, v, a = cast(text), cast(video), cast(audio)

    if tb is None:
        tb = _choose_tb(B)
    grid = (pl.cdiv(B, tb),)

    # Raise the scoped-VMEM limit only when a fat batch tile would exceed the
    # smallest default (16 MiB on v5e); toy shapes stay on the default.
    itemsize = jnp.dtype(compute_dtype).itemsize
    est = (2 * tb * (S_T * D_T + S_V * D_V + S_A * D_A) * itemsize    # inputs (2 bufs)
           + 2 * tb * n_pad * 4                                        # output (2 bufs)
           + 2 * (D_T + D_V + D_A + 1) * n_pad * itemsize)             # weights + bias
    vmem_limit = int(min(2 * est, 96 * 1024 * 1024)) if est > (12 << 20) else None

    kernel = functools.partial(_trimodal_kernel,
                               inv_st=1.0 / S_T,
                               inv_sv=1.0 / S_V,
                               inv_sa=1.0 / S_A)

    out_padded = pl.pallas_call(
        kernel,
        out_shape=jax.ShapeDtypeStruct((B, n_pad), jnp.float32),
        grid_spec=pltpu.PrefetchScalarGridSpec(
            num_scalar_prefetch=0,
            grid=grid,
            in_specs=[
                pl.BlockSpec((tb, S_T, D_T), lambda i: (i, 0, 0)),
                pl.BlockSpec((tb, S_V, D_V), lambda i: (i, 0, 0)),
                pl.BlockSpec((tb, S_A, D_A), lambda i: (i, 0, 0)),
                pl.BlockSpec((D_T, n_pad), lambda i: (0, 0)),   # resident weights
                pl.BlockSpec((D_V, n_pad), lambda i: (0, 0)),
                pl.BlockSpec((D_A, n_pad), lambda i: (0, 0)),
                pl.BlockSpec((1, n_pad), lambda i: (0, 0)),     # fused bias
            ],
            out_specs=pl.BlockSpec((tb, n_pad), lambda i: (i, 0)),
        ),
        compiler_params=pltpu.CompilerParams(
            dimension_semantics=("parallel",),
            vmem_limit_bytes=vmem_limit),
    )(t, v, a, packed["wt"], packed["wv"], packed["wa"], packed["bias"])

    return out_padded[:, :n_out] if strip_padding else out_padded


# ----------------------------------------------------------------------------
# Pure-JAX reference
# ----------------------------------------------------------------------------
def _reference(text, video, audio, params):
    def enc(x, w, b):
        pooled = jnp.mean(x, axis=1)
        return jnp.maximum(pooled @ w + b, 0.0)
    return jnp.concatenate([enc(text, params["wt"], params["bt"]),
                            enc(video, params["wv"], params["bv"]),
                            enc(audio, params["wa"], params["ba"])], axis=-1)


if __name__ == "__main__":
    key = jax.random.PRNGKey(0)
    (k_t, k_v, k_a,
     k_wt, k_wv, k_wa,
     k_bt, k_bv, k_ba) = jax.random.split(key, 9)

    B = 2           # batch
    E = 32          # per-modality embedding dim
    S_T, D_T = 8, 32    # text:  seq len, glove dim
    S_V, D_V = 6, 64    # video: frames,  visual feature dim
    S_A, D_A = 10, 40   # audio: frames,  acoustic feature dim

    text = jax.random.normal(k_t, (B, S_T, D_T), dtype=jnp.float32)
    video = jax.random.normal(k_v, (B, S_V, D_V), dtype=jnp.float32)
    audio = jax.random.normal(k_a, (B, S_A, D_A), dtype=jnp.float32)

    params = {
        "wt": jax.random.normal(k_wt, (D_T, E), dtype=jnp.float32) * 0.1,
        "wv": jax.random.normal(k_wv, (D_V, E), dtype=jnp.float32) * 0.1,
        "wa": jax.random.normal(k_wa, (D_A, E), dtype=jnp.float32) * 0.1,
        "bt": jax.random.normal(k_bt, (1, E), dtype=jnp.float32) * 0.1,
        "bv": jax.random.normal(k_bv, (1, E), dtype=jnp.float32) * 0.1,
        "ba": jax.random.normal(k_ba, (1, E), dtype=jnp.float32) * 0.1,
    }

    ref = _reference(text, video, audio, params)

    # Pack weights/bias once (outside the forward path).
    packed_bf16 = pack_trimodal_params(params, compute_dtype=jnp.bfloat16)
    packed_f32 = pack_trimodal_params(params, compute_dtype=jnp.float32)

    # Default bf16 operand path (f32 MXU accumulation, f32 bias/ReLU epilogue).
    fwd_bf16 = jax.jit(lambda t, v, a: trimodal_emotion_embedding(t, v, a, packed_bf16))
    out = jax.block_until_ready(fwd_bf16(text, video, audio))
    assert out.shape == (B, 3 * E), out.shape
    assert jnp.allclose(out, ref, atol=3e-2, rtol=3e-2), "bf16 mismatch vs reference"

    # f32 operand path (exact vs reference).
    fwd_f32 = jax.jit(lambda t, v, a: trimodal_emotion_embedding(t, v, a, packed_f32))
    out_f32 = jax.block_until_ready(fwd_f32(text, video, audio))
    assert jnp.allclose(out_f32, ref, atol=1e-5, rtol=1e-5), "f32 mismatch vs reference"

    print("KERNEL_OK")
</pallas_src>

<mosaic_0001>
module attributes {stable_mosaic.version = 11 : i64} {
  func.func @_trimodal_kernel(%arg0: i32, %arg1: memref<2x8x32xbf16, #tpu.memory_space<vmem>>, %arg2: memref<2x6x64xbf16, #tpu.memory_space<vmem>>, %arg3: memref<2x10x40xbf16, #tpu.memory_space<vmem>>, %arg4: memref<32x128xbf16, #tpu.memory_space<vmem>>, %arg5: memref<64x128xbf16, #tpu.memory_space<vmem>>, %arg6: memref<40x128xbf16, #tpu.memory_space<vmem>>, %arg7: memref<1x128xf32, #tpu.memory_space<vmem>>, %arg8: memref<2x128xf32, #tpu.memory_space<vmem>>) attributes {dimension_semantics = [#tpu.dimension_semantics<parallel>], iteration_bounds = array<i64: 1>, scalar_prefetch = 0 : i64, scratch_operands = 0 : i64, tpu.core_type = #tpu.core_type<tc>, window_params = [{transform_indices = @transform_0, window_bounds = array<i64: 2, 8, 32>}, {transform_indices = @transform_1, window_bounds = array<i64: 2, 6, 64>}, {transform_indices = @transform_2, window_bounds = array<i64: 2, 10, 40>}, {pipeline_mode = #tpu.pipeline_mode<synchronous>, transform_indices = @transform_3, window_bounds = array<i64: 32, 128>}, {pipeline_mode = #tpu.pipeline_mode<synchronous>, transform_indices = @transform_4, window_bounds = array<i64: 64, 128>}, {pipeline_mode = #tpu.pipeline_mode<synchronous>, transform_indices = @transform_5, window_bounds = array<i64: 40, 128>}, {pipeline_mode = #tpu.pipeline_mode<synchronous>, transform_indices = @transform_6, window_bounds = array<i64: 1, 128>}, {transform_indices = @transform_7, window_bounds = array<i64: 2, 128>}]} {
    %c0 = arith.constant 0 : index
    %c0_0 = arith.constant 0 : index
    %c0_1 = arith.constant 0 : index
    %0 = vector.load %arg1[%c0, %c0_0, %c0_1] : memref<2x8x32xbf16, #tpu.memory_space<vmem>>, vector<2x8x32xbf16>
    %1 = arith.extf %0 : vector<2x8x32xbf16> to vector<2x8x32xf32>
    %cst = arith.constant dense<0.000000e+00> : vector<2x32xf32>
    %2 = vector.multi_reduction <add>, %1, %cst [1] : vector<2x8x32xf32> to vector<2x32xf32>
    %cst_2 = arith.constant 1.250000e-01 : f32
    %3 = vector.broadcast %cst_2 : f32 to vector<2x32xf32>
    %4 = arith.mulf %2, %3 : vector<2x32xf32>
    %5 = arith.truncf %4 : vector<2x32xf32> to vector<2x32xbf16>
    %c0_3 = arith.constant 0 : index
    %c0_4 = arith.constant 0 : index
    %c0_5 = arith.constant 0 : index
    %6 = vector.load %arg2[%c0_3, %c0_4, %c0_5] : memref<2x6x64xbf16, #tpu.memory_space<vmem>>, vector<2x6x64xbf16>
    %7 = arith.extf %6 : vector<2x6x64xbf16> to vector<2x6x64xf32>
    %cst_6 = arith.constant dense<0.000000e+00> : vector<2x64xf32>
    %8 = vector.multi_reduction <add>, %7, %cst_6 [1] : vector<2x6x64xf32> to vector<2x64xf32>
    %cst_7 = arith.constant 0.166666672 : f32
    %9 = vector.broadcast %cst_7 : f32 to vector<2x64xf32>
    %10 = arith.mulf %8, %9 : vector<2x64xf32>
    %11 = arith.truncf %10 : vector<2x64xf32> to vector<2x64xbf16>
    %c0_8 = arith.constant 0 : index
    %c0_9 = arith.constant 0 : index
    %c0_10 = arith.constant 0 : index
    %12 = vector.load %arg3[%c0_8, %c0_9, %c0_10] : memref<2x10x40xbf16, #tpu.memory_space<vmem>>, vector<2x10x40xbf16>
    %13 = arith.extf %12 : vector<2x10x40xbf16> to vector<2x10x40xf32>
    %cst_11 = arith.constant dense<0.000000e+00> : vector<2x40xf32>
    %14 = vector.multi_reduction <add>, %13, %cst_11 [1] : vector<2x10x40xf32> to vector<2x40xf32>
    %cst_12 = arith.constant 1.000000e-01 : f32
    %15 = vector.broadcast %cst_12 : f32 to vector<2x40xf32>
    %16 = arith.mulf %14, %15 : vector<2x40xf32>
    %17 = arith.truncf %16 : vector<2x40xf32> to vector<2x40xbf16>
    %c0_13 = arith.constant 0 : index
    %c0_14 = arith.constant 0 : index
    %18 = vector.load %arg4[%c0_13, %c0_14] : memref<32x128xbf16, #tpu.memory_space<vmem>>, vector<32x128xbf16>
    %cst_15 = arith.constant dense<0.000000e+00> : vector<2x128xf32>
    %19 = tpu.matmul %5, %18, %cst_15 {dimension_numbers = #tpu.dot_dimension_numbers<[1], [0], [0], [1], [0, 0, 1, 1], [], []>} : vector<2x32xbf16>, vector<32x128xbf16>, vector<2x128xf32> -> vector<2x128xf32>
    %c0_16 = arith.constant 0 : index
    %c0_17 = arith.constant 0 : index
    %20 = vector.load %arg5[%c0_16, %c0_17] : memref<64x128xbf16, #tpu.memory_space<vmem>>, vector<64x128xbf16>
    %cst_18 = arith.constant dense<0.000000e+00> : vector<2x128xf32>
    %21 = tpu.matmul %11, %20, %cst_18 {dimension_numbers = #tpu.dot_dimension_numbers<[1], [0], [0], [1], [0, 0, 1, 1], [], []>} : vector<2x64xbf16>, vector<64x128xbf16>, vector<2x128xf32> -> vector<2x128xf32>
    %22 = arith.addf %19, %21 : vector<2x128xf32>
    %c0_19 = arith.constant 0 : index
    %c0_20 = arith.constant 0 : index
    %23 = vector.load %arg6[%c0_19, %c0_20] : memref<40x128xbf16, #tpu.memory_space<vmem>>, vector<40x128xbf16>
    %cst_21 = arith.constant dense<0.000000e+00> : vector<2x128xf32>
    %24 = tpu.matmul %17, %23, %cst_21 {dimension_numbers = #tpu.dot_dimension_numbers<[1], [0], [0], [1], [0, 0, 1, 1], [], []>} : vector<2x40xbf16>, vector<40x128xbf16>, vector<2x128xf32> -> vector<2x128xf32>
    %25 = arith.addf %22, %24 : vector<2x128xf32>
    %c0_22 = arith.constant 0 : index
    %c0_23 = arith.constant 0 : index
    %26 = vector.load %arg7[%c0_22, %c0_23] : memref<1x128xf32, #tpu.memory_space<vmem>>, vector<1x128xf32>
    %27 = vector.broadcast %26 : vector<1x128xf32> to vector<2x128xf32>
    %28 = arith.addf %25, %27 : vector<2x128xf32>
    %cst_24 = arith.constant 0.000000e+00 : f32
    %29 = vector.broadcast %cst_24 : f32 to vector<2x128xf32>
    %30 = arith.maximumf %28, %29 : vector<2x128xf32>
    %c0_25 = arith.constant 0 : index
    %c0_26 = arith.constant 0 : index
    %31 = vector.load %arg8[%c0_25, %c0_26] : memref<2x128xf32, #tpu.memory_space<vmem>>, vector<2x128xf32>
    tpu.vector_store %arg8[%c0_25, %c0_26], %30 {strides = array<i32>} : memref<2x128xf32, #tpu.memory_space<vmem>>, vector<2x128xf32>,
    return
  }
  func.func @transform_0(%arg0: i32) -> (i32, i32, i32) {
    %c0_i32 = arith.constant 0 : i32
    %c0_i32_0 = arith.constant 0 : i32
    %c0_i32_1 = arith.constant 0 : i32
    return %arg0, %c0_i32, %c0_i32_0 : i32, i32, i32
  }
  func.func @transform_1(%arg0: i32) -> (i32, i32, i32) {
    %c0_i32 = arith.constant 0 : i32
    %c0_i32_0 = arith.constant 0 : i32
    %c0_i32_1 = arith.constant 0 : i32
    return %arg0, %c0_i32, %c0_i32_0 : i32, i32, i32
  }
  func.func @transform_2(%arg0: i32) -> (i32, i32, i32) {
    %c0_i32 = arith.constant 0 : i32
    %c0_i32_0 = arith.constant 0 : i32
    %c0_i32_1 = arith.constant 0 : i32
    return %arg0, %c0_i32, %c0_i32_0 : i32, i32, i32
  }
  func.func @transform_3(%arg0: i32) -> (i32, i32) {
    %c0_i32 = arith.constant 0 : i32
    %c0_i32_0 = arith.constant 0 : i32
    %c0_i32_1 = arith.constant 0 : i32
    return %c0_i32, %c0_i32_0 : i32, i32
  }
  func.func @transform_4(%arg0: i32) -> (i32, i32) {
    %c0_i32 = arith.constant 0 : i32
    %c0_i32_0 = arith.constant 0 : i32
    %c0_i32_1 = arith.constant 0 : i32
    return %c0_i32, %c0_i32_0 : i32, i32
  }
  func.func @transform_5(%arg0: i32) -> (i32, i32) {
    %c0_i32 = arith.constant 0 : i32
    %c0_i32_0 = arith.constant 0 : i32
    %c0_i32_1 = arith.constant 0 : i32
    return %c0_i32, %c0_i32_0 : i32, i32
  }
  func.func @transform_6(%arg0: i32) -> (i32, i32) {
    %c0_i32 = arith.constant 0 : i32
    %c0_i32_0 = arith.constant 0 : i32
    %c0_i32_1 = arith.constant 0 : i32
    return %c0_i32, %c0_i32_0 : i32, i32
  }
  func.func @transform_7(%arg0: i32) -> (i32, i32) {
    %c0_i32 = arith.constant 0 : i32
    %c0_i32_0 = arith.constant 0 : i32
    return %arg0, %c0_i32 : i32, i32
  }
}

</mosaic_0001>

<bundles_post_ra>
// kernel: _lambda_.1
= control target key start
LH: loop header
LB: loop body
LE: loop exit
PB: predicated region body
PF: predicated region fallthrough
CT: control target
= control target key end

     0   :  { %vm229_vm0 = vcmask 1043456   ;;  %vm55_vm1 = vcmask 521216   ;;  %vm32_vm2 = vcmask 261120   ;;  %vm82_vm3 = vcmask 326656   ;;  %s454_s0 = inlined_call_operand.vmem [shape: bf16[2,8,32], index: 0, kind: input, shape index: {}]   ;;  %s455_s1 = inlined_call_operand.vmem [shape: bf16[2,6,64], index: 1, kind: input, shape index: {}]   ;;  %s456_s2 = inlined_call_operand.vmem [shape: bf16[2,10,40], index: 2, kind: input, shape index: {}]   ;;  %s457_s3 = inlined_call_operand.vmem [shape: bf16[32,128], index: 3, kind: input, shape index: {}]   ;;  %s458_s4 = inlined_call_operand.vmem [shape: bf16[64,128], index: 4, kind: input, shape index: {}]   ;;  %s459_s5 = inlined_call_operand.vmem [shape: bf16[40,128], index: 5, kind: input, shape index: {}]   ;;  %s460_s6 = inlined_call_operand.vmem [shape: f32[1,128], index: 6, kind: input, shape index: {}]   ;;  %s461_s7 = inlined_call_operand.hbm [shape: f32[2,128], index: 7, kind: output, shape index: {}]  }
   0x1   :  { %v310_v0 = vld [vmem:[%s458_s4 + $0x18] sm:$0xff]  ;;  %v204_v1 = vld [vmem:[%s459_s5 + $0x10] sm:$0xf]  ;;  %v306_v3 = vld [vmem:[%s457_s3 + $0x8] sm:$0xff]  ;;  %vm84_vm4 = vcmask 320512  }
   0x2   :  { %v220_v2 = vunpack.c.l.b16 %v204_v1  ;;  %157 = vmatpush.bf16.msra.mxu0 %v310_v0  ;;  %v309_v4 = vld [vmem:[%s458_s4 + $0x10] sm:$0xff]  ;;  %v305_v5 = vld [vmem:[%s457_s3] sm:$0xff]  ;;  %193 = vmatpush.bf16.msra.mxu1 %v306_v3  ;;  %v308_v10 = vld [vmem:[%s458_s4 + $0x8] sm:$0xff] }
   0x3   :  { %v51_v7 = vld [vmem:[%s455_s1] sm:$0x7]  ;;  %v52_v8 = vld [vmem:[%s455_s1 + $0x4] sm:$0x7]  ;;  %v76_v17 = vld [vmem:[%s456_s2 + $0x8] sm:$0xf] }
   0x4   :  { %v223_v6 = vpack.c.b16 %v220_v2, %v220_v2  ;;  %v314_v9 = vld [vmem:[%s454_s0] sm:$0xff]   ;;  %v53_v11 = vunpack.c.l.bf16 %v51_v7  ;;  %v54_v12 = vunpack.c.l.bf16 %v52_v8  ;;  %v312_v19 = vld [vmem:[%s459_s5 + $0x8] sm:$0xff]  ;;  %v80_v23 = vunpack.c.l.bf16 %v76_v17 }
   0x5   :  { %v315_v13 = vunpack.c.l.bf16 %v314_v9  ;;  %v316_v14 = vunpack.c.h.bf16 %v314_v9  ;;  %v74_v15 = vld [vmem:[%s456_s2] sm:$0xf]  ;;  %v75_v16 = vld [vmem:[%s456_s2 + $0x4] sm:$0x1]  ;;  %v77_v20 = vld [vmem:[%s456_s2 + $0xc] sm:$0x1] }
   0x6   :  { %v231_v18 = vsel %vm229_vm0, %v223_v6, 0  ;;  %v78_v21 = vunpack.c.l.bf16 %v74_v15  ;;  %v79_v22 = vunpack.c.l.bf16 %v75_v16  ;;  %158 = vmatpush.bf16.msra.mxu0 %v309_v4  ;;  %v56_v24 = vsel %vm55_vm1, %v53_v11, 0.0 }
   0x7   :  { %238 = vmatpush.bf16.msra.mxu2 %v231_v18  ;;  %v63_v25 = vsel %vm55_vm1, %v54_v12, 0.0  ;;  %v33_v26 = vsel %vm32_vm2, %v315_v13, 0.0  ;;  %v40_v27 = vsel %vm32_vm2, %v316_v14, 0.0 }
   0x8   :  { %12 = vsyncpa [#allocation3], 0  ;;  %194 = vmatpush.bf16.msra.mxu1 %v305_v5  ;;  %v57_v28 = vrot.slane %v56_v24, 4  ;;  %v64_v29 = vrot.slane %v63_v25, 4  ;;  %v34_v30 = vrot.slane %v33_v26, 4  ;;  %v41_v31 = vrot.slane %v40_v27, 4 }
   0x9   :  { %v81_v32 = vunpack.c.l.bf16 %v77_v20  ;;  %v83_v33 = vsel %vm82_vm3, %v78_v21, 0.0  ;;  %v85_v34 = vsel %vm84_vm4, %v79_v22, 0.0  ;;  %v93_v35 = vsel %vm82_vm3, %v80_v23, 0.0  ;;  %v307_v40 = vld [vmem:[%s458_s4] sm:$0xff]  ;;  %s345_s29 = smov [#allocation2]   ;;  %s261_s10 = sshll.u32 %s461_s7, 4  ;;  %s262_s10 = int_to_ptr.hbm [resolvable:$true] %s261_s10 }
   0xa   :  { %v58_v36 = vadd.f32 %v57_v28, %v56_v24  ;;  %v65_v37 = vadd.f32 %v64_v29, %v63_v25  ;;  %v35_v38 = vadd.f32 %v34_v30, %v33_v26  ;;  %v42_v39 = vadd.f32 %v41_v31, %v40_v27  ;;  %159 = vmatpush.bf16.msra.mxu0 %v308_v10  ;;  %v311_v41 = vld [vmem:[%s459_s5] sm:$0xff]  ;;  %s259_s30 = sshll.u32 %s345_s29, 4  ;;  %s260_s30 = int_to_ptr.vmem [resolvable:$true] %s259_s30 }
   0xb   :  { %239 = vmatpush.bf16.msra.mxu2 %v312_v19  ;;  %v86_v42 = vadd.f32 %v85_v34, %v83_v33  ;;  %v94_v43 = vsel %vm84_vm4, %v81_v32, 0.0  ;;  %vm122_vm5 = vcmask 1041409   ;;  %vm149_vm6 = vcmask 523264  }
   0xc   :  { %v59_v44 = vrot.slane %v58_v36, 2  ;;  %v66_v45 = vrot.slane %v65_v37, 2  ;;  %v36_v46 = vrot.slane %v35_v38, 2  ;;  %v43_v47 = vrot.slane %v42_v39, 2 }
   0xd   :  { %v87_v48 = vrot.slane %v86_v42, 4  ;;  %v95_v49 = vadd.f32 %v94_v43, %v93_v35 }
   0xe   :  { %v60_v50 = vadd.f32 %v59_v44, %v58_v36  ;;  %v67_v51 = vadd.f32 %v66_v45, %v65_v37  ;;  %v37_v52 = vadd.f32 %v36_v46, %v35_v38  ;;  %v44_v53 = vadd.f32 %v43_v47, %v42_v39  ;;  %160 = vmatpush.bf16.msra.mxu0 %v307_v40  ;;  %v318_v38 = vld [vmem:[%s460_s6] ss:$0 sm:$0xff] }
   0xf   :  { %240 = vmatpush.bf16.msra.mxu2 %v311_v41  ;;  %v88_v54 = vadd.f32 %v87_v48, %v86_v42  ;;  %v96_v55 = vrot.slane %v95_v49, 4 }
  0x10   :  { %v61_v56 = vrot.slane %v60_v50, 1  ;;  %v68_v57 = vrot.slane %v67_v51, 1  ;;  %v38_v58 = vrot.slane %v37_v52, 1  ;;  %v45_v59 = vrot.slane %v44_v53, 1 }
  0x11   :  { %v89_v60 = vrot.slane %v88_v54, 2  ;;  %v97_v61 = vadd.f32 %v96_v55, %v95_v49 }
  0x12   :  { %v62_v62 = vadd.f32 %v61_v56, %v60_v50  ;;  %v69_v63 = vadd.f32 %v68_v57, %v67_v51  ;;  %v39_v0 = vadd.f32 %v38_v58, %v37_v52  ;;  %v46_v1 = vadd.f32 %v45_v59, %v44_v53 }
  0x13   :  { %v90_v2 = vadd.f32 %v89_v60, %v88_v54  ;;  %v98_v3 = vrot.slane %v97_v61, 2 }
  0x14   :  { %v70_v4 = vmul.f32 0.16666667, %v62_v62  ;;  %v71_v5 = vmul.f32 0.16666667, %v69_v63  ;;  %v47_v6 = vmul.f32 0.125, %v39_v0  ;;  %v48_v7 = vmul.f32 0.125, %v46_v1 }
  0x15   :  { %v91_v8 = vrot.slane %v90_v2, 1  ;;  %v99_v9 = vadd.f32 %v98_v3, %v97_v61 }
  0x16   :  { %v72_v10 = vpack.c.bf16 %v70_v4, %v70_v4  ;;  %v73_v11 = vpack.c.bf16 %v71_v5, %v71_v5  ;;  %v49_v12 = vpack.c.bf16 %v47_v6, %v47_v6  ;;  %v50_v13 = vpack.c.bf16 %v48_v7, %v48_v7 }
  0x17   :  { %v92_v14 = vadd.f32 %v91_v8, %v90_v2  ;;  %v100_v15 = vrot.slane %v99_v9, 1 }
  0x18   :  { %v120_v16 = vunpack.c.l.b16 %v72_v10  ;;  %v121_v17 = vunpack.c.l.b16 %v73_v11  ;;  %v168_v18 = vunpack.c.l.b16 %v49_v12  ;;  %v169_v19 = vunpack.c.l.b16 %v50_v13 }
  0x19   :  { %v101_v20 = vadd.f32 %v100_v15, %v99_v9  ;;  %v102_v21 = vmul.f32 0.1, %v92_v14 }
  0x1a   :  { %v123_v22 = vsel %vm122_vm5, %v121_v17, %v120_v16  ;;  %v170_v23 = vsel %vm122_vm5, %v169_v19, %v168_v18 }
  0x1b   :  { %v124_v24 = vpack.c.b16 %v123_v22, %v123_v22  ;;  %v171_v25 = vpack.c.b16 %v170_v23, %v170_v23  ;;  %v103_v26 = vmul.f32 0.1, %v101_v20  ;;  %v104_v27 = vpack.c.bf16 %v102_v21, %v102_v21 }
  0x1d   :  { %286 = vmatmul.msk.bf16.vlgmr.msra.gmra.mxu0 %vm149_vm6, %v124_v24  ;;  %295 = vmatmul.msk.bf16.vlgmr.msra.gmra.mxu1 %vm32_vm2, %v171_v25  ;;  %v105_v28 = vpack.c.bf16 %v103_v26, %v103_v26  ;;  %v207_v29 = vunpack.c.l.b16 %v104_v27 }
  0x1f   :  { %v208_v30 = vunpack.c.l.b16 %v105_v28 }
  0x21   :  { %v209_v31 = vsel %vm122_vm5, %v208_v30, %v207_v29 }
  0x22   :  { %v210_v32 = vpack.c.b16 %v209_v31, %v209_v31 }
  0x24   :  { %304 = vmatmul.msk.bf16.vlgmr.msra.gmra.mxu2 %vm82_vm3, %v210_v32 }
  0x9a   :  { %v162_v33 = vpop.f32.mrf.mxu0  ;;  %v196_v34 = vpop.f32.mrf.mxu1 }
  0x9b   :  { %v197_v37 = vadd.f32 %v196_v34, %v162_v33 }
  0xa2   :  { %v164_v35 = vpop.f32.mrf.mxu0  ;;  %v198_v36 = vpop.f32.mrf.mxu1 }
  0xa7   :  { %v242_v39 = vpop.f32.mrf.mxu2 }
  0xa8   :  { %v246_v40 = vadd.f32 %v242_v39, %v197_v37 }
  0xaa   :  { %v251_v41 = vadd.f32 %v318_v38, %v246_v40 }
  0xac   :  { %v252_v42 = vmax.f32 %v251_v41, 0.0 }
  0xae   :  { %253 = vst [vmem:[#allocation2] sm:$0x3] %v252_v42 }
  0xaf   :  { %v244_v43 = vpop.f32.mrf.mxu2  ;;  %264 = dma.vmem_to_hbm [thread:$0]  %s260_s30, 32, %s262_s10, [#allocation3]  }
  0xb0   :  { %343 = dma.done.wait [#allocation3], 32  }
  0xb1   :  { %344 = vsyncadd [#allocation3], 4294967264 }
  0xb2   :  { %269 = vsyncpa [#allocation3], 1 }

</bundles_post_ra>
